<compile_context>
chip_gen: v5e
topology: v5e:2x2
jax: 0.10.0
libtpu: 0.0.40
codegen_flags: <defaults>
</compile_context>

<pallas_src>
import functools

import jax
import jax.numpy as jnp
from jax.experimental import pallas as pl
from jax.experimental.pallas import tpu as pltpu

LANE = 128          # lane width: feature dims padded to this for dense vregs
SUBLANE_BF16 = 16   # bf16 packs 16 rows per sublane group -> batch tiles align to 16


def _round_up(x, m):
    return ((x + m - 1) // m) * m


def _mlp_kernel(x_ref, w1_ref, b1_ref, w2_ref, b2_ref, w3_ref, b3_ref, o_ref,
                xpad_ref):
    """One batch tile: zero-pad x to lane width in VMEM, then 3 fused matmuls
    + bias adds + ReLUs.  Everything stays VMEM-resident."""
    in_feat = x_ref.shape[-1]
    mxu_dtype = w1_ref.dtype                        # bf16 (or f32) MXU operands

    # Lane-dense, zero-padded copy of the raw [tb, in_feat] f32 tile.
    # Zeroed every step: with a "parallel" grid axis on v7x each TensorCore
    # owns its own scratch, so a program_id==0 guard would leave one core's
    # pad lanes uninitialized.  Cost is one tiny VMEM store pass.
    xpad_ref[...] = jnp.zeros_like(xpad_ref)
    xpad_ref[:, :in_feat] = x_ref[...].astype(mxu_dtype)
    x = xpad_ref[...]                               # [tb, IN_PAD] bf16, lane-dense

    h1 = jnp.dot(x, w1_ref[...], preferred_element_type=jnp.float32) + b1_ref[...]
    h1 = jnp.maximum(h1, 0.0)                       # f32 VPU math (v5e-safe)
    h2 = jnp.dot(h1.astype(mxu_dtype), w2_ref[...],
                 preferred_element_type=jnp.float32) + b2_ref[...]
    h2 = jnp.maximum(h2, 0.0)
    out = jnp.dot(h2.astype(mxu_dtype), w3_ref[...],
                  preferred_element_type=jnp.float32) + b3_ref[...]
    o_ref[...] = out.astype(o_ref.dtype)            # [tb, OUT_PAD] unmasked-width vst


@functools.partial(jax.jit, static_argnames=("output_size", "block_b", "min_grid"))
def linear_model_forward(x, w1, b1, w2, b2, w3, b3, *, output_size,
                         block_b=2048, min_grid=1):
    """x: [B, input_size] f32 (raw, unpadded). Weights are the padded [in, out]
    params from init_params (bf16 by default). Returns [B, output_size] f32.

    min_grid=2 on v7x to use both TensorCores; leave 1 on v5e/v6e."""
    B, in_feat = x.shape
    in_pad = w1.shape[0]
    out_pad = w3.shape[1]
    mxu_dtype = w1.dtype

    # Batch tiling: just enough tiles (>= min_grid), each rounded up to the
    # bf16 sublane packing. No wrapper-side batch pad: Pallas masks the ragged
    # last block, so padded-row HBM writes never happen.
    grid_n = max(min_grid, pl.cdiv(B, block_b))
    tb = _round_up(pl.cdiv(B, grid_n), SUBLANE_BF16)
    grid_n = pl.cdiv(B, tb)                         # drop empty trailing tiles

    full = lambda a: pl.BlockSpec(a.shape, lambda i: (0,) * a.ndim)

    out = pl.pallas_call(
        _mlp_kernel,
        out_shape=jax.ShapeDtypeStruct((B, out_pad), jnp.float32),
        grid=(grid_n,),
        in_specs=[
            pl.BlockSpec((tb, in_feat), lambda i: (i, 0)),  # raw f32 x, batch-tiled
            full(w1), full(b1),                             # weights/biases resident
            full(w2), full(b2),
            full(w3), full(b3),
        ],
        out_specs=pl.BlockSpec((tb, out_pad), lambda i: (i, 0)),
        scratch_shapes=[pltpu.VMEM((tb, in_pad), mxu_dtype)],  # lane-dense x pad buf
        compiler_params=pltpu.CompilerParams(
            dimension_semantics=("parallel",),      # v7x: shard batch over 2 TCs
            vmem_limit_bytes=32 * 1024 * 1024),     # portable across v5e/v6e/v7x
    )(x, w1, b1, w2, b2, w3, b3)

    return out[:, :output_size]


def init_params(key, input_size, hidden_size, output_size, *,
                mxu_dtype=jnp.bfloat16):
    """nn.Linear-style U(-1/sqrt(fan_in)) init. Weights are returned already
    transposed to [in, out], zero-padded to lane-aligned dims (input, hidden
    AND output all padded to 128), and cast to the MXU dtype once (biases f32)."""
    in_pad = _round_up(input_size, LANE)
    hid_pad = _round_up(hidden_size, LANE)
    out_pad = _round_up(output_size, LANE)

    def linear(k, fan_in, fan_out, pad_in, pad_out):
        kw, kb = jax.random.split(k)
        bound = 1.0 / jnp.sqrt(jnp.float32(fan_in))
        w = jax.random.uniform(kw, (fan_in, fan_out), jnp.float32, -bound, bound)
        b = jax.random.uniform(kb, (1, fan_out), jnp.float32, -bound, bound)
        w = jnp.pad(w, ((0, pad_in - fan_in), (0, pad_out - fan_out)))
        b = jnp.pad(b, ((0, 0), (0, pad_out - fan_out)))
        return w.astype(mxu_dtype), b.astype(jnp.float32)

    k1, k2, k3 = jax.random.split(key, 3)
    w1, b1 = linear(k1, input_size, hidden_size, in_pad, hid_pad)
    w2, b2 = linear(k2, hidden_size, hidden_size, hid_pad, hid_pad)
    w3, b3 = linear(k3, hidden_size, output_size, hid_pad, out_pad)
    return w1, b1, w2, b2, w3, b3


def reference_forward(x, w1, b1, w2, b2, w3, b3, *, output_size):
    """Pure-JAX reference using the same padded / cast params."""
    mxu_dtype = w1.dtype
    in_pad = w1.shape[0]
    xp = jnp.pad(x, ((0, 0), (0, in_pad - x.shape[1]))).astype(mxu_dtype)
    h1 = jax.nn.relu(jnp.dot(xp, w1, preferred_element_type=jnp.float32) + b1)
    h2 = jax.nn.relu(jnp.dot(h1.astype(mxu_dtype), w2,
                             preferred_element_type=jnp.float32) + b2)
    out = jnp.dot(h2.astype(mxu_dtype), w3,
                  preferred_element_type=jnp.float32) + b3
    return out[:, :output_size]


if __name__ == "__main__":
    # Snake-game sizes: 11 features in, hidden=32, 3 actions out.
    input_size, hidden_size, output_size = 11, 32, 3

    key = jax.random.PRNGKey(0)
    kx1, kx2, kp = jax.random.split(key, 3)
    params = init_params(kp, input_size, hidden_size, output_size)

    # (a) small ragged batch, single tile (optimal path on v5e / v6e).
    x_a = jax.random.normal(kx1, (37, input_size), jnp.float32)
    out_a = jax.block_until_ready(
        linear_model_forward(x_a, *params, output_size=output_size))
    ref_a = reference_forward(x_a, *params, output_size=output_size)
    assert out_a.shape == (37, output_size)
    assert jnp.allclose(out_a, ref_a, atol=1e-3, rtol=1e-3), "mismatch (single tile)"

    # (b) two batch tiles on the "parallel" axis (both TensorCores on v7x).
    x_b = jax.random.normal(kx2, (96, input_size), jnp.float32)
    out_b = jax.block_until_ready(
        linear_model_forward(x_b, *params, output_size=output_size, min_grid=2))
    ref_b = reference_forward(x_b, *params, output_size=output_size)
    assert out_b.shape == (96, output_size)
    assert jnp.allclose(out_b, ref_b, atol=1e-3, rtol=1e-3), "mismatch (two tiles)"

    # TODO(synk): Linear_model.save() (torch.save checkpointing) has no kernel
    # equivalent and is intentionally out of scope.
    print("KERNEL_OK")
</pallas_src>

<mosaic_0001>
module attributes {stable_mosaic.version = 11 : i64} {
  func.func @_mlp_kernel(%arg0: i32, %arg1: memref<48x11xf32, #tpu.memory_space<vmem>>, %arg2: memref<128x128xbf16, #tpu.memory_space<vmem>>, %arg3: memref<1x128xf32, #tpu.memory_space<vmem>>, %arg4: memref<128x128xbf16, #tpu.memory_space<vmem>>, %arg5: memref<1x128xf32, #tpu.memory_space<vmem>>, %arg6: memref<128x128xbf16, #tpu.memory_space<vmem>>, %arg7: memref<1x128xf32, #tpu.memory_space<vmem>>, %arg8: memref<48x128xf32, #tpu.memory_space<vmem>>, %arg9: memref<48x128xbf16, #tpu.memory_space<vmem>>) attributes {dimension_semantics = [#tpu.dimension_semantics<parallel>], iteration_bounds = array<i64: 1>, scalar_prefetch = 0 : i64, scratch_operands = 1 : i64, tpu.core_type = #tpu.core_type<tc>, window_params = [{transform_indices = @transform_0, window_bounds = array<i64: 48, 11>}, {pipeline_mode = #tpu.pipeline_mode<synchronous>, transform_indices = @transform_1, window_bounds = array<i64: 128, 128>}, {pipeline_mode = #tpu.pipeline_mode<synchronous>, transform_indices = @transform_2, window_bounds = array<i64: 1, 128>}, {pipeline_mode = #tpu.pipeline_mode<synchronous>, transform_indices = @transform_3, window_bounds = array<i64: 128, 128>}, {pipeline_mode = #tpu.pipeline_mode<synchronous>, transform_indices = @transform_4, window_bounds = array<i64: 1, 128>}, {pipeline_mode = #tpu.pipeline_mode<synchronous>, transform_indices = @transform_5, window_bounds = array<i64: 128, 128>}, {pipeline_mode = #tpu.pipeline_mode<synchronous>, transform_indices = @transform_6, window_bounds = array<i64: 1, 128>}, {transform_indices = @transform_7, window_bounds = array<i64: 48, 128>}]} {
    %cst = arith.constant 0.000000e+00 : bf16
    %0 = vector.broadcast %cst : bf16 to vector<48x128xbf16>
    %c0 = arith.constant 0 : index
    %c0_0 = arith.constant 0 : index
    %1 = vector.load %arg9[%c0, %c0_0] : memref<48x128xbf16, #tpu.memory_space<vmem>>, vector<48x128xbf16>
    tpu.vector_store %arg9[%c0, %c0_0], %0 {strides = array<i32>} : memref<48x128xbf16, #tpu.memory_space<vmem>>, vector<48x128xbf16>,
    %c0_1 = arith.constant 0 : index
    %c0_2 = arith.constant 0 : index
    %2 = vector.load %arg1[%c0_1, %c0_2] : memref<48x11xf32, #tpu.memory_space<vmem>>, vector<48x11xf32>
    %3 = arith.truncf %2 : vector<48x11xf32> to vector<48x11xbf16>
    %c0_3 = arith.constant 0 : index
    %c0_4 = arith.constant 0 : index
    %4 = vector.load %arg9[%c0_3, %c0_4] : memref<48x128xbf16, #tpu.memory_space<vmem>>, vector<48x11xbf16>
    tpu.vector_store %arg9[%c0_3, %c0_4], %3 {strides = array<i32>} : memref<48x128xbf16, #tpu.memory_space<vmem>>, vector<48x11xbf16>,
    %c0_5 = arith.constant 0 : index
    %c0_6 = arith.constant 0 : index
    %5 = vector.load %arg9[%c0_5, %c0_6] : memref<48x128xbf16, #tpu.memory_space<vmem>>, vector<48x128xbf16>
    %c0_7 = arith.constant 0 : index
    %c0_8 = arith.constant 0 : index
    %6 = vector.load %arg2[%c0_7, %c0_8] : memref<128x128xbf16, #tpu.memory_space<vmem>>, vector<128x128xbf16>
    %cst_9 = arith.constant dense<0.000000e+00> : vector<48x128xf32>
    %7 = tpu.matmul %5, %6, %cst_9 {dimension_numbers = #tpu.dot_dimension_numbers<[1], [0], [0], [1], [0, 0, 1, 1], [], []>} : vector<48x128xbf16>, vector<128x128xbf16>, vector<48x128xf32> -> vector<48x128xf32>
    %c0_10 = arith.constant 0 : index
    %c0_11 = arith.constant 0 : index
    %8 = vector.load %arg3[%c0_10, %c0_11] : memref<1x128xf32, #tpu.memory_space<vmem>>, vector<1x128xf32>
    %9 = vector.broadcast %8 : vector<1x128xf32> to vector<48x128xf32>
    %10 = arith.addf %7, %9 : vector<48x128xf32>
    %cst_12 = arith.constant 0.000000e+00 : f32
    %11 = vector.broadcast %cst_12 : f32 to vector<48x128xf32>
    %12 = arith.maximumf %10, %11 : vector<48x128xf32>
    %13 = arith.truncf %12 : vector<48x128xf32> to vector<48x128xbf16>
    %c0_13 = arith.constant 0 : index
    %c0_14 = arith.constant 0 : index
    %14 = vector.load %arg4[%c0_13, %c0_14] : memref<128x128xbf16, #tpu.memory_space<vmem>>, vector<128x128xbf16>
    %cst_15 = arith.constant dense<0.000000e+00> : vector<48x128xf32>
    %15 = tpu.matmul %13, %14, %cst_15 {dimension_numbers = #tpu.dot_dimension_numbers<[1], [0], [0], [1], [0, 0, 1, 1], [], []>} : vector<48x128xbf16>, vector<128x128xbf16>, vector<48x128xf32> -> vector<48x128xf32>
    %c0_16 = arith.constant 0 : index
    %c0_17 = arith.constant 0 : index
    %16 = vector.load %arg5[%c0_16, %c0_17] : memref<1x128xf32, #tpu.memory_space<vmem>>, vector<1x128xf32>
    %17 = vector.broadcast %16 : vector<1x128xf32> to vector<48x128xf32>
    %18 = arith.addf %15, %17 : vector<48x128xf32>
    %cst_18 = arith.constant 0.000000e+00 : f32
    %19 = vector.broadcast %cst_18 : f32 to vector<48x128xf32>
    %20 = arith.maximumf %18, %19 : vector<48x128xf32>
    %21 = arith.truncf %20 : vector<48x128xf32> to vector<48x128xbf16>
    %c0_19 = arith.constant 0 : index
    %c0_20 = arith.constant 0 : index
    %22 = vector.load %arg6[%c0_19, %c0_20] : memref<128x128xbf16, #tpu.memory_space<vmem>>, vector<128x128xbf16>
    %cst_21 = arith.constant dense<0.000000e+00> : vector<48x128xf32>
    %23 = tpu.matmul %21, %22, %cst_21 {dimension_numbers = #tpu.dot_dimension_numbers<[1], [0], [0], [1], [0, 0, 1, 1], [], []>} : vector<48x128xbf16>, vector<128x128xbf16>, vector<48x128xf32> -> vector<48x128xf32>
    %c0_22 = arith.constant 0 : index
    %c0_23 = arith.constant 0 : index
    %24 = vector.load %arg7[%c0_22, %c0_23] : memref<1x128xf32, #tpu.memory_space<vmem>>, vector<1x128xf32>
    %25 = vector.broadcast %24 : vector<1x128xf32> to vector<48x128xf32>
    %26 = arith.addf %23, %25 : vector<48x128xf32>
    %c0_24 = arith.constant 0 : index
    %c0_25 = arith.constant 0 : index
    %27 = vector.load %arg8[%c0_24, %c0_25] : memref<48x128xf32, #tpu.memory_space<vmem>>, vector<48x128xf32>
    tpu.vector_store %arg8[%c0_24, %c0_25], %26 {strides = array<i32>} : memref<48x128xf32, #tpu.memory_space<vmem>>, vector<48x128xf32>,
    return
  }
  func.func @transform_0(%arg0: i32) -> (i32, i32) {
    %c0_i32 = arith.constant 0 : i32
    %c0_i32_0 = arith.constant 0 : i32
    return %arg0, %c0_i32 : i32, i32
  }
  func.func @transform_1(%arg0: i32) -> (i32, i32) {
    %c0_i32 = arith.constant 0 : i32
    %c0_i32_0 = arith.constant 0 : i32
    %c0_i32_1 = arith.constant 0 : i32
    return %c0_i32, %c0_i32_0 : i32, i32
  }
  func.func @transform_2(%arg0: i32) -> (i32, i32) {
    %c0_i32 = arith.constant 0 : i32
    %c0_i32_0 = arith.constant 0 : i32
    %c0_i32_1 = arith.constant 0 : i32
    return %c0_i32, %c0_i32_0 : i32, i32
  }
  func.func @transform_3(%arg0: i32) -> (i32, i32) {
    %c0_i32 = arith.constant 0 : i32
    %c0_i32_0 = arith.constant 0 : i32
    %c0_i32_1 = arith.constant 0 : i32
    return %c0_i32, %c0_i32_0 : i32, i32
  }
  func.func @transform_4(%arg0: i32) -> (i32, i32) {
    %c0_i32 = arith.constant 0 : i32
    %c0_i32_0 = arith.constant 0 : i32
    %c0_i32_1 = arith.constant 0 : i32
    return %c0_i32, %c0_i32_0 : i32, i32
  }
  func.func @transform_5(%arg0: i32) -> (i32, i32) {
    %c0_i32 = arith.constant 0 : i32
    %c0_i32_0 = arith.constant 0 : i32
    %c0_i32_1 = arith.constant 0 : i32
    return %c0_i32, %c0_i32_0 : i32, i32
  }
  func.func @transform_6(%arg0: i32) -> (i32, i32) {
    %c0_i32 = arith.constant 0 : i32
    %c0_i32_0 = arith.constant 0 : i32
    %c0_i32_1 = arith.constant 0 : i32
    return %c0_i32, %c0_i32_0 : i32, i32
  }
  func.func @transform_7(%arg0: i32) -> (i32, i32) {
    %c0_i32 = arith.constant 0 : i32
    %c0_i32_0 = arith.constant 0 : i32
    return %arg0, %c0_i32 : i32, i32
  }
}

</mosaic_0001>

<bundles_post_ra>
// kernel: linear_model_forward.1
= control target key start
LH: loop header
LB: loop body
LE: loop exit
PB: predicated region body
PF: predicated region fallthrough
CT: control target
= control target key end

     0   :  { %12 = vsyncpa [#allocation4], 0  ;;  %s813_s0 = inlined_call_operand.vmem [shape: f32[37,11], index: 0, kind: input, shape index: {}]   ;;  %s814_s1 = inlined_call_operand.hbm [shape: bf16[128,128], index: 1, kind: input, shape index: {}]   ;;  %s815_s2 = inlined_call_operand.vmem [shape: f32[1,128], index: 2, kind: input, shape index: {}]   ;;  %s816_s3 = inlined_call_operand.hbm [shape: bf16[128,128], index: 3, kind: input, shape index: {}]   ;;  %s817_s4 = inlined_call_operand.vmem [shape: f32[1,128], index: 4, kind: input, shape index: {}]   ;;  %s818_s5 = inlined_call_operand.hbm [shape: bf16[128,128], index: 5, kind: input, shape index: {}]   ;;  %s819_s6 = inlined_call_operand.vmem [shape: f32[1,128], index: 6, kind: input, shape index: {}]   ;;  %s820_s7 = inlined_call_operand.vmem [shape: f32[37,128], index: 7, kind: output, shape index: {}]  }
   0x1   :  { %13 = vsyncpa [#allocation6], 0  ;;  %s35_s26 = sshll.u32 %s816_s3, 4  ;;  %s710_s27 = smov [#allocation5]   ;;  %s36_s26 = int_to_ptr.hbm [resolvable:$true] %s35_s26 }
   0x2   :  { %s37_s28 = sshll.u32 %s710_s27, 4  ;;  %s20_s8 = sshll.u32 %s814_s1, 4  ;;  %s38_s28 = int_to_ptr.vmem [resolvable:$true] %s37_s28  ;;  %s21_s8 = int_to_ptr.hbm [resolvable:$true] %s20_s8 }
   0x3   :  { %s711_s9 = smov 64   ;;  %s712_s10 = smov 4  }
   0x4   :  { %43 = dma.hbm_to_vmem [thread:$0]  %s36_s26, 1024, %s38_s28, [#allocation6], %s711_s9, %s711_s9, %s712_s10  }
   0x5   :  { %s713_s11 = smov [#allocation3]   ;;  %s50_s15 = sshll.u32 %s818_s5, 4  ;;  %s51_s15 = int_to_ptr.hbm [resolvable:$true] %s50_s15 }
   0x6   :  { %s22_s12 = sshll.u32 %s713_s11, 4  ;;  %s714_s3 = smov [#allocation7]   ;;  %s23_s12 = int_to_ptr.vmem [resolvable:$true] %s22_s12 }
   0x7   :  { %28 = dma.hbm_to_vmem [thread:$0]  %s21_s8, 1024, %s23_s12, [#allocation4], %s711_s9, %s711_s9, %s712_s10  }
   0x8   :  { %s52_s16 = sshll.u32 %s714_s3, 4  ;;  %s53_s16 = int_to_ptr.vmem [resolvable:$true] %s52_s16 }
   0x9   :  { %58 = dma.hbm_to_vmem [thread:$0]  %s51_s15, 1024, %s53_s16, [#allocation6], %s711_s9, %s711_s9, %s712_s10  }
   0xa   :  { %706 = dma.done.wait [#allocation4], 1024  }
   0xb   :  { %707 = vsyncadd [#allocation4], 4294966272 }
   0xc   :  { %708 = dma.done.wait [#allocation6], 2048  }
   0xd   :  { %709 = vsyncadd [#allocation6], 4294965248  ;;  %v715_v0 = vmov 0   ;;  %v600_v1 = vld [vmem:[#allocation3 + $0x38] sm:$0xff]  ;;  %v599_v2 = vld [vmem:[#allocation3 + $0x30] sm:$0xff]  ;;  %vm92_vm0 = vcmask 84992  }
   0xe   :  { %74 = vst [vmem:[#allocation2] sm:$0xf] %v715_v0  ;;  %191 = vmatpush.bf16.msra.mxu0 %v600_v1  ;;  %617 = vmatpush.bf16.msra.mxu3 %v600_v1  ;;  %v80_v3 = vld [vmem:[%s813_s0] sm:$0xff]  ;;  %v81_v4 = vld [vmem:[%s813_s0 + $0x8] sm:$0xff]  ;;  %v82_v6 = vld [vmem:[%s813_s0 + $0x10] sm:$0xff] }
   0xf   :  { %75 = vst [vmem:[#allocation2 + $0x4] sm:$0xf] %v715_v0  ;;  %v86_v5 = vpack.c.bf16 %v80_v3, %v80_v3  ;;  %v83_v7 = vld [vmem:[%s813_s0 + $0x18] sm:$0xff]  ;;  %v87_v8 = vpack.c.bf16 %v81_v4, %v81_v4  ;;  %v88_v9 = vpack.c.bf16 %v82_v6, %v82_v6  ;;  %v84_v11 = vld [vmem:[%s813_s0 + $0x20] sm:$0xff]  ;;  %v85_v12 = vld [vmem:[%s813_s0 + $0x28] sm:$0xff] }
  0x10   :  { %76 = vst [vmem:[#allocation2 + $0x8] sm:$0xf] %v715_v0  ;;  %v89_v10 = vpack.c.bf16 %v83_v7, %v83_v7  ;;  %v90_v13 = vpack.c.bf16 %v84_v11, %v84_v11  ;;  %v598_v14 = vld [vmem:[#allocation3 + $0x28] sm:$0xff]  ;;  %v91_v15 = vpack.c.bf16 %v85_v12, %v85_v12  ;;  %v597_v16 = vld [vmem:[#allocation3 + $0x20] sm:$0xff]  ;;  %v596_v17 = vld [vmem:[#allocation3 + $0x18] sm:$0xff] }
  0x11   :  { %77 = vst [vmem:[#allocation2 + $0xc] sm:$0xf] %v715_v0  ;;  %v608_v18 = vld [vmem:[#allocation5 + $0x38] sm:$0xff]  ;;  %v595_v19 = vld [vmem:[#allocation3 + $0x10] sm:$0xff]  ;;  %v594_v21 = vld [vmem:[#allocation3 + $0x8] sm:$0xff] }
  0x12   :  { %78 = vst [vmem:[#allocation2 + $0x10] sm:$0xf] %v715_v0  ;;  %192 = vmatpush.bf16.msra.mxu0 %v599_v2  ;;  %618 = vmatpush.bf16.msra.mxu3 %v599_v2  ;;  %v607_v20 = vld [vmem:[#allocation5 + $0x30] sm:$0xff]  ;;  %v606_v22 = vld [vmem:[#allocation5 + $0x28] sm:$0xff]  ;;  %v593_v23 = vld [vmem:[#allocation3] sm:$0xff] }
  0x13   :  { %79 = vst [vmem:[#allocation2 + $0x14] sm:$0xf] %v715_v0  ;;  %292 = vmatpush.bf16.msra.mxu1 %v608_v18  ;;  %v605_v24 = vld [vmem:[#allocation5 + $0x20] sm:$0xff]  ;;  %v604_v28 = vld [vmem:[#allocation5 + $0x18] sm:$0xff]  ;;  %v603_v29 = vld [vmem:[#allocation5 + $0x10] sm:$0xff] }
  0x14   :  { %93 = vst.msk [vmem:[#allocation2] sm:$0xf] %vm92_vm0, %v86_v5  ;;  %v602_v30 = vld [vmem:[#allocation5 + $0x8] sm:$0xff]  ;;  %v601_v31 = vld [vmem:[#allocation5] sm:$0xff]  ;;  %v616_v42 = vld [vmem:[#allocation7 + $0x38] sm:$0xff] }
  0x15   :  { %94 = vst.msk [vmem:[#allocation2 + $0x4] sm:$0xf] %vm92_vm0, %v87_v8  ;;  %v631_v33 = vld [vmem:[%s815_s2] ss:$0 sm:$0xff]  ;;  %393 = vmatpush.bf16.msra.mxu2 %v616_v42  ;;  %v615_v43 = vld [vmem:[#allocation7 + $0x30] sm:$0xff]  ;;  %v613_v50 = vld [vmem:[#allocation7 + $0x20] sm:$0xff] }
  0x16   :  { %95 = vst.msk [vmem:[#allocation2 + $0x8] sm:$0xf] %vm92_vm0, %v88_v9  ;;  %193 = vmatpush.bf16.msra.mxu0 %v598_v14  ;;  %619 = vmatpush.bf16.msra.mxu3 %v598_v14  ;;  %v614_v46 = vld [vmem:[#allocation7 + $0x28] sm:$0xff]  ;;  %v612_v58 = vld [vmem:[#allocation7 + $0x18] sm:$0xff]  ;;  %v611_v59 = vld [vmem:[#allocation7 + $0x10] sm:$0xff] }
  0x17   :  { %96 = vst.msk [vmem:[#allocation2 + $0xc] sm:$0xf] %vm92_vm0, %v89_v10  ;;  %293 = vmatpush.bf16.msra.mxu1 %v607_v20  ;;  %v610_v60 = vld [vmem:[#allocation7 + $0x8] sm:$0xff]  ;;  %v609_v61 = vld [vmem:[#allocation7] sm:$0xff] }
  0x18   :  { %97 = vst.msk [vmem:[#allocation2 + $0x10] sm:$0xf] %vm92_vm0, %v90_v13  ;;  %v632_v63 = vld [vmem:[%s817_s4] ss:$0 sm:$0xff] }
  0x19   :  { %98 = vst.msk [vmem:[#allocation2 + $0x14] sm:$0xf] %vm92_vm0, %v91_v15  ;;  %394 = vmatpush.bf16.msra.mxu2 %v615_v43  ;;  %v633_v20 = vld [vmem:[%s819_s6] ss:$0 sm:$0xff] }
  0x1a   :  { %194 = vmatpush.bf16.msra.mxu0 %v597_v16  ;;  %620 = vmatpush.bf16.msra.mxu3 %v597_v16 }
  0x1b   :  { %294 = vmatpush.bf16.msra.mxu1 %v606_v22 }
  0x1c   :  { %v590_v25 = vld [vmem:[#allocation2] sm:$0xff] }
  0x1d   :  { %395 = vmatpush.bf16.msra.mxu2 %v614_v46 }
  0x1e   :  { %195 = vmatpush.bf16.msra.mxu0 %v596_v17  ;;  %621 = vmatpush.bf16.msra.mxu3 %v596_v17  ;;  %v591_v26 = vld [vmem:[#allocation2 + $0x8] sm:$0xff] }
  0x1f   :  { %295 = vmatpush.bf16.msra.mxu1 %v605_v24 }
  0x20   :  { %v592_v27 = vld [vmem:[#allocation2 + $0x10] sm:$0xff] }
  0x21   :  { %396 = vmatpush.bf16.msra.mxu2 %v613_v50 }
  0x22   :  { %196 = vmatpush.bf16.msra.mxu0 %v595_v19  ;;  %622 = vmatpush.bf16.msra.mxu3 %v595_v19 }
  0x23   :  { %296 = vmatpush.bf16.msra.mxu1 %v604_v28 }
  0x25   :  { %397 = vmatpush.bf16.msra.mxu2 %v612_v58 }
  0x26   :  { %197 = vmatpush.bf16.msra.mxu0 %v594_v21  ;;  %623 = vmatpush.bf16.msra.mxu3 %v594_v21 }
  0x27   :  { %297 = vmatpush.bf16.msra.mxu1 %v603_v29 }
  0x29   :  { %398 = vmatpush.bf16.msra.mxu2 %v611_v59 }
  0x2a   :  { %198 = vmatpush.bf16.msra.mxu0 %v593_v23  ;;  %624 = vmatpush.bf16.msra.mxu3 %v593_v23 }
  0x2b   :  { %298 = vmatpush.bf16.msra.mxu1 %v602_v30 }
  0x2d   :  { %199 = vmatmul.bf16.vlgmr.msra.gmra.mxu0 %v590_v25  ;;  %204 = vmatmul.bf16.vlgmr.msra.gmra.mxu3 %v591_v26 }
  0x2e   :  { %399 = vmatpush.bf16.msra.mxu2 %v610_v60 }
  0x2f   :  { %299 = vmatpush.bf16.msra.mxu1 %v601_v31 }
  0x32   :  { %400 = vmatpush.bf16.msra.mxu2 %v609_v61 }
  0x3d   :  { %209 = vmatmul.bf16.gmra.mxu3 %v592_v27 }
  0xaa   :  { %v200_v32 = vpop.f32.mrf.mxu0 }
  0xab   :  { %v201_v35 = vadd.f32 %v631_v33, %v200_v32 }
  0xad   :  { %v215_v38 = vmax.f32 %v201_v35, 0.0 }
  0xb0   :  { %v205_v34 = vpop.f32.mrf.mxu3 }
  0xb1   :  { %v206_v44 = vadd.f32 %v631_v33, %v205_v34 }
  0xb2   :  { %v202_v36 = vpop.f32.mrf.mxu0 }
  0xb3   :  { %v203_v37 = vadd.f32 %v631_v33, %v202_v36  ;;  %v217_v48 = vmax.f32 %v206_v44, 0.0 }
  0xb5   :  { %v216_v39 = vmax.f32 %v203_v37, 0.0 }
  0xb7   :  { %v221_v40 = vpack.c.bf16 %v216_v39, %v215_v38 }
  0xb8   :  { %v207_v41 = vpop.f32.mrf.mxu3 }
  0xb9   :  { %300 = vmatmul.bf16.vlgmr.msra.gmra.mxu1 %v221_v40  ;;  %v208_v45 = vadd.f32 %v631_v33, %v207_v41 }
  0xbb   :  { %v218_v49 = vmax.f32 %v208_v45, 0.0 }
  0xbd   :  { %v222_v51 = vpack.c.bf16 %v218_v49, %v217_v48 }
  0xc0   :  { %v210_v47 = vpop.f32.mrf.mxu3 }
  0xc1   :  { %v211_v53 = vadd.f32 %v631_v33, %v210_v47 }
  0xc3   :  { %v219_v55 = vmax.f32 %v211_v53, 0.0 }
  0xc8   :  { %v212_v52 = vpop.f32.mrf.mxu3 }
  0xc9   :  { %305 = vmatmul.bf16.gmra.mxu1 %v222_v51  ;;  %v213_v54 = vadd.f32 %v631_v33, %v212_v52 }
  0xcb   :  { %v220_v56 = vmax.f32 %v213_v54, 0.0 }
  0xcd   :  { %v223_v57 = vpack.c.bf16 %v220_v56, %v219_v55 }
  0xd9   :  { %310 = vmatmul.bf16.gmra.mxu1 %v223_v57 }
 0x136   :  { %v301_v62 = vpop.f32.mrf.mxu1 }
 0x137   :  { %v302_v0 = vadd.f32 %v632_v63, %v301_v62 }
 0x139   :  { %v316_v3 = vmax.f32 %v302_v0, 0.0 }
 0x13e   :  { %v303_v1 = vpop.f32.mrf.mxu1 }
 0x13f   :  { %v304_v2 = vadd.f32 %v632_v63, %v303_v1 }
 0x141   :  { %v317_v4 = vmax.f32 %v304_v2, 0.0 }
 0x143   :  { %v322_v5 = vpack.c.bf16 %v317_v4, %v316_v3 }
 0x145   :  { %401 = vmatmul.bf16.vlgmr.msra.gmra.mxu2 %v322_v5 }
 0x146   :  { %v306_v6 = vpop.f32.mrf.mxu1 }
 0x147   :  { %v307_v7 = vadd.f32 %v632_v63, %v306_v6 }
 0x149   :  { %v318_v10 = vmax.f32 %v307_v7, 0.0 }
 0x14e   :  { %v308_v8 = vpop.f32.mrf.mxu1 }
 0x14f   :  { %v309_v9 = vadd.f32 %v632_v63, %v308_v8 }
 0x151   :  { %v319_v11 = vmax.f32 %v309_v9, 0.0 }
 0x153   :  { %v323_v12 = vpack.c.bf16 %v319_v11, %v318_v10 }
 0x155   :  { %406 = vmatmul.bf16.gmra.mxu2 %v323_v12 }
 0x156   :  { %v311_v13 = vpop.f32.mrf.mxu1 }
 0x157   :  { %v312_v14 = vadd.f32 %v632_v63, %v311_v13 }
 0x159   :  { %v320_v17 = vmax.f32 %v312_v14, 0.0 }
 0x15e   :  { %v313_v15 = vpop.f32.mrf.mxu1 }
 0x15f   :  { %v314_v16 = vadd.f32 %v632_v63, %v313_v15 }
 0x161   :  { %v321_v18 = vmax.f32 %v314_v16, 0.0 }
 0x163   :  { %v324_v19 = vpack.c.bf16 %v321_v18, %v320_v17 }
 0x165   :  { %411 = vmatmul.bf16.gmra.mxu2 %v324_v19 }
 0x1c8   :  { %v402_v21 = vpop.f32.mrf.mxu2 }
 0x1c9   :  { %v403_v22 = vadd.f32 %v633_v20, %v402_v21 }
 0x1cb   :  { %462 = vst [vmem:[%s820_s7] sm:$0xff] %v403_v22 }
 0x1d0   :  { %v404_v23 = vpop.f32.mrf.mxu2 }
 0x1d1   :  { %v405_v24 = vadd.f32 %v633_v20, %v404_v23 }
 0x1d3   :  { %464 = vst [vmem:[%s820_s7 + $0x8] sm:$0xff] %v405_v24 }
 0x1d8   :  { %v407_v25 = vpop.f32.mrf.mxu2 }
 0x1d9   :  { %v408_v26 = vadd.f32 %v633_v20, %v407_v25 }
 0x1db   :  { %466 = vst [vmem:[%s820_s7 + $0x10] sm:$0xff] %v408_v26 }
 0x1e0   :  { %v409_v27 = vpop.f32.mrf.mxu2 }
 0x1e1   :  { %v410_v28 = vadd.f32 %v633_v20, %v409_v27 }
 0x1e3   :  { %468 = vst [vmem:[%s820_s7 + $0x18] sm:$0xff] %v410_v28 }
 0x1e8   :  { %v412_v29 = vpop.f32.mrf.mxu2 }
 0x1e9   :  { %v413_v30 = vadd.f32 %v633_v20, %v412_v29 }
 0x1eb   :  { %470 = vst [vmem:[%s820_s7 + $0x20] sm:$0xff] %v413_v30 }
 0x1f0   :  { %v414_v31 = vpop.f32.mrf.mxu2 }
 0x1f1   :  { %476 = vsyncpa [#allocation4], 1 }
 0x1f2   :  { %477 = vsyncpa [#allocation6], 1 }

</bundles_post_ra>
